<compile_context>
chip_gen: v7x
topology: tpu7x:2x2x1
jax: 0.10.0
libtpu: 0.0.40
codegen_flags: <defaults>
</compile_context>

<pallas_src>
import functools

import jax
import jax.numpy as jnp
import numpy as np
from jax.experimental import pallas as pl
from jax.experimental.pallas import tpu as pltpu

EPS = 1e-5


def fused_dws_kernel(x_ref, coords_ref, w9_ref, b1_ref, pw_ref, b2_ref, o_ref, *, H, W):
    """One batch element per grid step; spatial axis flattened into the lane dim.

    x_ref     : (1, C, H*W)     input image (NCHW with H,W flattened)
    coords_ref: (2, H*W) int32  row 0 = h index, row 1 = w index of each flat position
    w9_ref    : (C, 9)          depthwise 3x3 taps (dy*3+dx along lanes), BN1 scale folded
    b1_ref    : (C, 1)          folded BN1 bias
    pw_ref    : (Cout, C)       pointwise weight, BN2 scale folded (bf16 or f32)
    b2_ref    : (Cout, 1)       folded BN2 bias
    o_ref     : (1, Cout, H*W)  output (NCHW order, lane-dense)
    """
    HW = H * W

    x = x_ref[0].astype(jnp.float32)                 # (C, HW)
    w9 = w9_ref[...].astype(jnp.float32)             # (C, 9)

    coords = coords_ref[...]                         # (2, HW) int32
    h_pos = coords[0:1, :]                           # (1, HW)
    w_pos = coords[1:2, :]                           # (1, HW)

    def tap_mask(oy, ox):
        # Valid iff the neighbour (h+oy, w+ox) lies inside the image.
        m = None
        if oy == -1:
            m = h_pos >= 1
        elif oy == 1:
            m = h_pos < H - 1
        if ox == -1:
            mw = w_pos >= 1
            m = mw if m is None else (m & mw)
        elif ox == 1:
            mw = w_pos < W - 1
            m = mw if m is None else (m & mw)
        return m

    # 9-tap depthwise conv: each tap is one XLU lane-roll of the whole image plus a
    # border mask (replaces the zero-padded scratch + materialized shifted copies).
    acc = None
    for dy in range(3):
        oy = dy - 1
        for dx in range(3):
            ox = dx - 1
            shift = oy * W + ox                       # flat-index offset of the neighbour
            if shift == 0:
                shifted = x
            else:
                # shifted[p] == x[p + shift] wherever the mask is valid.
                shifted = pltpu.roll(x, (-shift) % HW, axis=1)
            mask = tap_mask(oy, ox)
            if mask is not None:
                shifted = jnp.where(mask, shifted, 0.0)
            k = dy * 3 + dx
            tap_w = w9[:, k:k + 1]                    # (C, 1), broadcast over lanes
            contrib = shifted * tap_w
            acc = contrib if acc is None else acc + contrib

    # Depthwise BN (scale already folded into the taps) + ReLU -- stays on-chip.
    y = jnp.maximum(acc + b1_ref[...], 0.0)          # (C, HW)

    # Pointwise 1x1 conv as (Cout, C) @ (C, H*W): bf16 operands, f32 accumulation.
    z = jnp.dot(pw_ref[...], y.astype(pw_ref.dtype),
                preferred_element_type=jnp.float32)  # (Cout, HW)
    z = jnp.maximum(z + b2_ref[...], 0.0)
    o_ref[0] = z.astype(o_ref.dtype)


def fold_bn(gamma, beta, mean, var):
    scale = gamma / jnp.sqrt(var + EPS)
    bias = beta - mean * scale
    return scale, bias


def dws_conv_block(x_nchw, params, *, use_bf16_matmul=True):
    """Pallas forward of DwsConvBlock (eval-mode BN). x_nchw: (N, C_in, H, W) float32."""
    dw_w, pw_w, bn1, bn2 = params["dw_w"], params["pw_w"], params["bn1"], params["bn2"]
    N, C, H, W = x_nchw.shape
    Cout = pw_w.shape[0]
    HW = H * W

    # --- parameter prep (tiny, plain JAX) -------------------------------------------
    s1, b1 = fold_bn(*bn1)
    s2, b2 = fold_bn(*bn2)
    w9 = (dw_w[:, 0, :, :].reshape(C, 9) * s1[:, None]).astype(jnp.float32)   # (C, 9)
    mm_dtype = jnp.bfloat16 if use_bf16_matmul else jnp.float32
    pw = (pw_w[:, :, 0, 0] * s2[:, None]).astype(mm_dtype)                    # (Cout, C)
    b1c = b1.reshape(C, 1).astype(jnp.float32)
    b2c = b2.reshape(Cout, 1).astype(jnp.float32)

    # Tiny constant coordinate table for the in-kernel border masks.
    hh = np.repeat(np.arange(H, dtype=np.int32), W)
    ww = np.tile(np.arange(W, dtype=np.int32), H)
    coords = jnp.asarray(np.stack([hh, ww], axis=0))                          # (2, HW)

    # Contiguous metadata-only reshape: NO NCHW<->NHWC transpose, no extra HBM pass.
    x_flat = x_nchw.reshape(N, C, HW)

    # Per-step VMEM working set (double-buffered in/out blocks + kernel temporaries),
    # with an explicit limit kept below v7x's 64 MiB physical VMEM.
    per_step = 4 * HW * (4 * C + 8 * C + 4 * Cout)
    vmem_limit = int(min(64 * 2 ** 20, max(32 * 2 ** 20, 2 * per_step)))

    cost = pl.CostEstimate(
        flops=2 * N * HW * C * (Cout + 9),
        transcendentals=0,
        bytes_accessed=int(x_flat.size * 4 + N * Cout * HW * 4 + w9.size * 4
                           + pw.size * pw.dtype.itemsize + b1c.size * 4 + b2c.size * 4),
    )

    out_flat = pl.pallas_call(
        functools.partial(fused_dws_kernel, H=H, W=W),
        out_shape=jax.ShapeDtypeStruct((N, Cout, HW), x_nchw.dtype),
        grid=(N,),
        in_specs=[
            pl.BlockSpec((1, C, HW), lambda n: (n, 0, 0)),     # activations (streamed)
            pl.BlockSpec((2, HW), lambda n: (0, 0)),           # coord table (resident)
            pl.BlockSpec((C, 9), lambda n: (0, 0)),            # dw taps (resident)
            pl.BlockSpec((C, 1), lambda n: (0, 0)),            # bn1 bias
            pl.BlockSpec((Cout, C), lambda n: (0, 0)),         # pw weights (resident)
            pl.BlockSpec((Cout, 1), lambda n: (0, 0)),         # bn2 bias
        ],
        out_specs=pl.BlockSpec((1, Cout, HW), lambda n: (n, 0, 0)),
        compiler_params=pltpu.CompilerParams(
            dimension_semantics=("parallel",),
            vmem_limit_bytes=vmem_limit,
        ),
        cost_estimate=cost,
    )(x_flat, coords, w9, b1c, pw, b2c)

    return out_flat.reshape(N, Cout, H, W)


def reference_forward(x_nchw, params):
    """Pure-JAX reference (mirrors the PyTorch module in eval mode)."""
    dw_w, pw_w, bn1, bn2 = params["dw_w"], params["pw_w"], params["bn1"], params["bn2"]
    C = x_nchw.shape[1]

    def bn_relu(y, bn):
        g, b, m, v = bn
        y = (y - m[None, :, None, None]) / jnp.sqrt(v + EPS)[None, :, None, None]
        y = y * g[None, :, None, None] + b[None, :, None, None]
        return jnp.maximum(y, 0.0)

    y = jax.lax.conv_general_dilated(
        x_nchw, dw_w, window_strides=(1, 1), padding=((1, 1), (1, 1)),
        dimension_numbers=("NCHW", "OIHW", "NCHW"), feature_group_count=C)
    y = bn_relu(y, bn1)
    z = jax.lax.conv_general_dilated(
        y, pw_w, window_strides=(1, 1), padding=((0, 0), (0, 0)),
        dimension_numbers=("NCHW", "OIHW", "NCHW"))
    return bn_relu(z, bn2)


def init_params(key, in_channels, out_channels):
    ks = jax.random.split(key, 10)
    dw_w = 0.1 * jax.random.normal(ks[0], (in_channels, 1, 3, 3), jnp.float32)
    pw_w = 0.1 * jax.random.normal(ks[1], (out_channels, in_channels, 1, 1), jnp.float32)
    bn1 = (
        jax.random.uniform(ks[2], (in_channels,), jnp.float32, 0.5, 1.5),   # gamma
        0.1 * jax.random.normal(ks[3], (in_channels,), jnp.float32),        # beta
        0.1 * jax.random.normal(ks[4], (in_channels,), jnp.float32),        # running_mean
        jax.random.uniform(ks[5], (in_channels,), jnp.float32, 0.5, 1.5),   # running_var
    )
    bn2 = (
        jax.random.uniform(ks[6], (out_channels,), jnp.float32, 0.5, 1.5),
        0.1 * jax.random.normal(ks[7], (out_channels,), jnp.float32),
        0.1 * jax.random.normal(ks[8], (out_channels,), jnp.float32),
        jax.random.uniform(ks[9], (out_channels,), jnp.float32, 0.5, 1.5),
    )
    return {"dw_w": dw_w, "pw_w": pw_w, "bn1": bn1, "bn2": bn2}


if __name__ == "__main__":
    N, Cin, Cout, H, W = 2, 4, 8, 16, 16
    key = jax.random.PRNGKey(0)
    kx, kp = jax.random.split(key)
    x = jax.random.normal(kx, (N, Cin, H, W), jnp.float32)
    params = init_params(kp, Cin, Cout)

    ref = jax.block_until_ready(reference_forward(x, params))

    # f32-MXU variant: tight check of the conv / BN-fold / ReLU math.
    out_f32 = jax.block_until_ready(dws_conv_block(x, params, use_bf16_matmul=False))
    assert out_f32.shape == (N, Cout, H, W), out_f32.shape
    assert np.allclose(np.asarray(out_f32), np.asarray(ref), atol=1e-4, rtol=1e-4)

    # Default performance variant: bf16 MXU operands with f32 accumulation
    # (looser tolerance reflects bf16 operand rounding only).
    out = jax.block_until_ready(dws_conv_block(x, params))
    assert out.shape == (N, Cout, H, W), out.shape
    assert np.allclose(np.asarray(out), np.asarray(ref), atol=3e-2, rtol=3e-2)

    print("KERNEL_OK")
</pallas_src>

<mosaic_0001>
module attributes {stable_mosaic.version = 11 : i64} {
  func.func @fused_dws_kernel(%arg0: i32, %arg1: memref<1x4x256xf32, #tpu.memory_space<vmem>>, %arg2: memref<2x256xi32, #tpu.memory_space<vmem>>, %arg3: memref<4x9xf32, #tpu.memory_space<vmem>>, %arg4: memref<4x1xf32, #tpu.memory_space<vmem>>, %arg5: memref<8x4xf32, #tpu.memory_space<vmem>>, %arg6: memref<8x1xf32, #tpu.memory_space<vmem>>, %arg7: memref<1x8x256xf32, #tpu.memory_space<vmem>>) attributes {dimension_semantics = [#tpu.dimension_semantics<parallel>], iteration_bounds = array<i64: 2>, scalar_prefetch = 0 : i64, scratch_operands = 0 : i64, tpu.core_type = #tpu.core_type<tc>, window_params = [{transform_indices = @transform_0, window_bounds = array<i64: 1, 4, 256>}, {pipeline_mode = #tpu.pipeline_mode<synchronous>, transform_indices = @transform_1, window_bounds = array<i64: 2, 256>}, {pipeline_mode = #tpu.pipeline_mode<synchronous>, transform_indices = @transform_2, window_bounds = array<i64: 4, 9>}, {pipeline_mode = #tpu.pipeline_mode<synchronous>, transform_indices = @transform_3, window_bounds = array<i64: 4, 1>}, {pipeline_mode = #tpu.pipeline_mode<synchronous>, transform_indices = @transform_4, window_bounds = array<i64: 8, 4>}, {pipeline_mode = #tpu.pipeline_mode<synchronous>, transform_indices = @transform_5, window_bounds = array<i64: 8, 1>}, {transform_indices = @transform_6, window_bounds = array<i64: 1, 8, 256>}]} {
    %c0 = arith.constant 0 : index
    %c0_0 = arith.constant 0 : index
    %c0_1 = arith.constant 0 : index
    %0 = vector.load %arg1[%c0, %c0_0, %c0_1] : memref<1x4x256xf32, #tpu.memory_space<vmem>>, vector<1x4x256xf32>
    %1 = vector.shape_cast %0 : vector<1x4x256xf32> to vector<4x256xf32>
    %c0_2 = arith.constant 0 : index
    %c0_3 = arith.constant 0 : index
    %2 = vector.load %arg3[%c0_2, %c0_3] : memref<4x9xf32, #tpu.memory_space<vmem>>, vector<4x9xf32>
    %c0_4 = arith.constant 0 : index
    %c0_5 = arith.constant 0 : index
    %3 = vector.load %arg2[%c0_4, %c0_5] : memref<2x256xi32, #tpu.memory_space<vmem>>, vector<2x256xi32>
    %4 = vector.extract_strided_slice %3 {offsets = [0, 0], sizes = [1, 256], strides = [1, 1]} : vector<2x256xi32> to vector<1x256xi32>
    %5 = vector.extract_strided_slice %3 {offsets = [1, 0], sizes = [1, 256], strides = [1, 1]} : vector<2x256xi32> to vector<1x256xi32>
    %c17_i32 = arith.constant 17 : i32
    %6 = tpu.dynamic_rotate %1 by %c17_i32 dim 1 : vector<4x256xf32>, i32 -> vector<4x256xf32>
    %c1_i32 = arith.constant 1 : i32
    %7 = vector.broadcast %c1_i32 : i32 to vector<1x256xi32>
    %8 = arith.cmpi sge, %4, %7 : vector<1x256xi32>
    %c1_i32_6 = arith.constant 1 : i32
    %9 = vector.broadcast %c1_i32_6 : i32 to vector<1x256xi32>
    %10 = arith.cmpi sge, %5, %9 : vector<1x256xi32>
    %11 = arith.andi %8, %10 : vector<1x256xi1>
    %cst = arith.constant 0.000000e+00 : f32
    %12 = vector.shape_cast %11 : vector<1x256xi1> to vector<1x256xi1>
    %13 = vector.broadcast %12 : vector<1x256xi1> to vector<4x256xi1>
    %14 = vector.broadcast %cst : f32 to vector<4x256xf32>
    %15 = arith.select %13, %6, %14 : vector<4x256xi1>, vector<4x256xf32>
    %16 = vector.extract_strided_slice %2 {offsets = [0, 0], sizes = [4, 1], strides = [1, 1]} : vector<4x9xf32> to vector<4x1xf32>
    %17 = vector.broadcast %16 : vector<4x1xf32> to vector<4x256xf32>
    %18 = arith.mulf %15, %17 : vector<4x256xf32>
    %c16_i32 = arith.constant 16 : i32
    %19 = tpu.dynamic_rotate %1 by %c16_i32 dim 1 : vector<4x256xf32>, i32 -> vector<4x256xf32>
    %c1_i32_7 = arith.constant 1 : i32
    %20 = vector.broadcast %c1_i32_7 : i32 to vector<1x256xi32>
    %21 = arith.cmpi sge, %4, %20 : vector<1x256xi32>
    %cst_8 = arith.constant 0.000000e+00 : f32
    %22 = vector.shape_cast %21 : vector<1x256xi1> to vector<1x256xi1>
    %23 = vector.broadcast %22 : vector<1x256xi1> to vector<4x256xi1>
    %24 = vector.broadcast %cst_8 : f32 to vector<4x256xf32>
    %25 = arith.select %23, %19, %24 : vector<4x256xi1>, vector<4x256xf32>
    %26 = vector.extract_strided_slice %2 {offsets = [0, 1], sizes = [4, 1], strides = [1, 1]} : vector<4x9xf32> to vector<4x1xf32>
    %27 = vector.broadcast %26 : vector<4x1xf32> to vector<4x256xf32>
    %28 = arith.mulf %25, %27 : vector<4x256xf32>
    %29 = arith.addf %18, %28 : vector<4x256xf32>
    %c15_i32 = arith.constant 15 : i32
    %30 = tpu.dynamic_rotate %1 by %c15_i32 dim 1 : vector<4x256xf32>, i32 -> vector<4x256xf32>
    %c1_i32_9 = arith.constant 1 : i32
    %31 = vector.broadcast %c1_i32_9 : i32 to vector<1x256xi32>
    %32 = arith.cmpi sge, %4, %31 : vector<1x256xi32>
    %c15_i32_10 = arith.constant 15 : i32
    %33 = vector.broadcast %c15_i32_10 : i32 to vector<1x256xi32>
    %34 = arith.cmpi slt, %5, %33 : vector<1x256xi32>
    %35 = arith.andi %32, %34 : vector<1x256xi1>
    %cst_11 = arith.constant 0.000000e+00 : f32
    %36 = vector.shape_cast %35 : vector<1x256xi1> to vector<1x256xi1>
    %37 = vector.broadcast %36 : vector<1x256xi1> to vector<4x256xi1>
    %38 = vector.broadcast %cst_11 : f32 to vector<4x256xf32>
    %39 = arith.select %37, %30, %38 : vector<4x256xi1>, vector<4x256xf32>
    %40 = vector.extract_strided_slice %2 {offsets = [0, 2], sizes = [4, 1], strides = [1, 1]} : vector<4x9xf32> to vector<4x1xf32>
    %41 = vector.broadcast %40 : vector<4x1xf32> to vector<4x256xf32>
    %42 = arith.mulf %39, %41 : vector<4x256xf32>
    %43 = arith.addf %29, %42 : vector<4x256xf32>
    %c1_i32_12 = arith.constant 1 : i32
    %44 = tpu.dynamic_rotate %1 by %c1_i32_12 dim 1 : vector<4x256xf32>, i32 -> vector<4x256xf32>
    %c1_i32_13 = arith.constant 1 : i32
    %45 = vector.broadcast %c1_i32_13 : i32 to vector<1x256xi32>
    %46 = arith.cmpi sge, %5, %45 : vector<1x256xi32>
    %cst_14 = arith.constant 0.000000e+00 : f32
    %47 = vector.shape_cast %46 : vector<1x256xi1> to vector<1x256xi1>
    %48 = vector.broadcast %47 : vector<1x256xi1> to vector<4x256xi1>
    %49 = vector.broadcast %cst_14 : f32 to vector<4x256xf32>
    %50 = arith.select %48, %44, %49 : vector<4x256xi1>, vector<4x256xf32>
    %51 = vector.extract_strided_slice %2 {offsets = [0, 3], sizes = [4, 1], strides = [1, 1]} : vector<4x9xf32> to vector<4x1xf32>
    %52 = vector.broadcast %51 : vector<4x1xf32> to vector<4x256xf32>
    %53 = arith.mulf %50, %52 : vector<4x256xf32>
    %54 = arith.addf %43, %53 : vector<4x256xf32>
    %55 = vector.extract_strided_slice %2 {offsets = [0, 4], sizes = [4, 1], strides = [1, 1]} : vector<4x9xf32> to vector<4x1xf32>
    %56 = vector.broadcast %55 : vector<4x1xf32> to vector<4x256xf32>
    %57 = arith.mulf %1, %56 : vector<4x256xf32>
    %58 = arith.addf %54, %57 : vector<4x256xf32>
    %c255_i32 = arith.constant 255 : i32
    %59 = tpu.dynamic_rotate %1 by %c255_i32 dim 1 : vector<4x256xf32>, i32 -> vector<4x256xf32>
    %c15_i32_15 = arith.constant 15 : i32
    %60 = vector.broadcast %c15_i32_15 : i32 to vector<1x256xi32>
    %61 = arith.cmpi slt, %5, %60 : vector<1x256xi32>
    %cst_16 = arith.constant 0.000000e+00 : f32
    %62 = vector.shape_cast %61 : vector<1x256xi1> to vector<1x256xi1>
    %63 = vector.broadcast %62 : vector<1x256xi1> to vector<4x256xi1>
    %64 = vector.broadcast %cst_16 : f32 to vector<4x256xf32>
    %65 = arith.select %63, %59, %64 : vector<4x256xi1>, vector<4x256xf32>
    %66 = vector.extract_strided_slice %2 {offsets = [0, 5], sizes = [4, 1], strides = [1, 1]} : vector<4x9xf32> to vector<4x1xf32>
    %67 = vector.broadcast %66 : vector<4x1xf32> to vector<4x256xf32>
    %68 = arith.mulf %65, %67 : vector<4x256xf32>
    %69 = arith.addf %58, %68 : vector<4x256xf32>
    %c241_i32 = arith.constant 241 : i32
    %70 = tpu.dynamic_rotate %1 by %c241_i32 dim 1 : vector<4x256xf32>, i32 -> vector<4x256xf32>
    %c15_i32_17 = arith.constant 15 : i32
    %71 = vector.broadcast %c15_i32_17 : i32 to vector<1x256xi32>
    %72 = arith.cmpi slt, %4, %71 : vector<1x256xi32>
    %c1_i32_18 = arith.constant 1 : i32
    %73 = vector.broadcast %c1_i32_18 : i32 to vector<1x256xi32>
    %74 = arith.cmpi sge, %5, %73 : vector<1x256xi32>
    %75 = arith.andi %72, %74 : vector<1x256xi1>
    %cst_19 = arith.constant 0.000000e+00 : f32
    %76 = vector.shape_cast %75 : vector<1x256xi1> to vector<1x256xi1>
    %77 = vector.broadcast %76 : vector<1x256xi1> to vector<4x256xi1>
    %78 = vector.broadcast %cst_19 : f32 to vector<4x256xf32>
    %79 = arith.select %77, %70, %78 : vector<4x256xi1>, vector<4x256xf32>
    %80 = vector.extract_strided_slice %2 {offsets = [0, 6], sizes = [4, 1], strides = [1, 1]} : vector<4x9xf32> to vector<4x1xf32>
    %81 = vector.broadcast %80 : vector<4x1xf32> to vector<4x256xf32>
    %82 = arith.mulf %79, %81 : vector<4x256xf32>
    %83 = arith.addf %69, %82 : vector<4x256xf32>
    %c240_i32 = arith.constant 240 : i32
    %84 = tpu.dynamic_rotate %1 by %c240_i32 dim 1 : vector<4x256xf32>, i32 -> vector<4x256xf32>
    %c15_i32_20 = arith.constant 15 : i32
    %85 = vector.broadcast %c15_i32_20 : i32 to vector<1x256xi32>
    %86 = arith.cmpi slt, %4, %85 : vector<1x256xi32>
    %cst_21 = arith.constant 0.000000e+00 : f32
    %87 = vector.shape_cast %86 : vector<1x256xi1> to vector<1x256xi1>
    %88 = vector.broadcast %87 : vector<1x256xi1> to vector<4x256xi1>
    %89 = vector.broadcast %cst_21 : f32 to vector<4x256xf32>
    %90 = arith.select %88, %84, %89 : vector<4x256xi1>, vector<4x256xf32>
    %91 = vector.extract_strided_slice %2 {offsets = [0, 7], sizes = [4, 1], strides = [1, 1]} : vector<4x9xf32> to vector<4x1xf32>
    %92 = vector.broadcast %91 : vector<4x1xf32> to vector<4x256xf32>
    %93 = arith.mulf %90, %92 : vector<4x256xf32>
    %94 = arith.addf %83, %93 : vector<4x256xf32>
    %c239_i32 = arith.constant 239 : i32
    %95 = tpu.dynamic_rotate %1 by %c239_i32 dim 1 : vector<4x256xf32>, i32 -> vector<4x256xf32>
    %c15_i32_22 = arith.constant 15 : i32
    %96 = vector.broadcast %c15_i32_22 : i32 to vector<1x256xi32>
    %97 = arith.cmpi slt, %4, %96 : vector<1x256xi32>
    %c15_i32_23 = arith.constant 15 : i32
    %98 = vector.broadcast %c15_i32_23 : i32 to vector<1x256xi32>
    %99 = arith.cmpi slt, %5, %98 : vector<1x256xi32>
    %100 = arith.andi %97, %99 : vector<1x256xi1>
    %cst_24 = arith.constant 0.000000e+00 : f32
    %101 = vector.shape_cast %100 : vector<1x256xi1> to vector<1x256xi1>
    %102 = vector.broadcast %101 : vector<1x256xi1> to vector<4x256xi1>
    %103 = vector.broadcast %cst_24 : f32 to vector<4x256xf32>
    %104 = arith.select %102, %95, %103 : vector<4x256xi1>, vector<4x256xf32>
    %105 = vector.extract_strided_slice %2 {offsets = [0, 8], sizes = [4, 1], strides = [1, 1]} : vector<4x9xf32> to vector<4x1xf32>
    %106 = vector.broadcast %105 : vector<4x1xf32> to vector<4x256xf32>
    %107 = arith.mulf %104, %106 : vector<4x256xf32>
    %108 = arith.addf %94, %107 : vector<4x256xf32>
    %c0_25 = arith.constant 0 : index
    %c0_26 = arith.constant 0 : index
    %109 = vector.load %arg4[%c0_25, %c0_26] : memref<4x1xf32, #tpu.memory_space<vmem>>, vector<4x1xf32>
    %110 = vector.broadcast %109 : vector<4x1xf32> to vector<4x256xf32>
    %111 = arith.addf %108, %110 : vector<4x256xf32>
    %cst_27 = arith.constant 0.000000e+00 : f32
    %112 = vector.broadcast %cst_27 : f32 to vector<4x256xf32>
    %113 = arith.maximumf %111, %112 : vector<4x256xf32>
    %c0_28 = arith.constant 0 : index
    %c0_29 = arith.constant 0 : index
    %114 = vector.load %arg5[%c0_28, %c0_29] : memref<8x4xf32, #tpu.memory_space<vmem>>, vector<8x4xf32>
    %cst_30 = arith.constant dense<0.000000e+00> : vector<8x256xf32>
    %115 = tpu.matmul %114, %113, %cst_30 {dimension_numbers = #tpu.dot_dimension_numbers<[1], [0], [0], [1], [0, 0, 1, 1], [], []>} : vector<8x4xf32>, vector<4x256xf32>, vector<8x256xf32> -> vector<8x256xf32>
    %c0_31 = arith.constant 0 : index
    %c0_32 = arith.constant 0 : index
    %116 = vector.load %arg6[%c0_31, %c0_32] : memref<8x1xf32, #tpu.memory_space<vmem>>, vector<8x1xf32>
    %117 = vector.broadcast %116 : vector<8x1xf32> to vector<8x256xf32>
    %118 = arith.addf %115, %117 : vector<8x256xf32>
    %cst_33 = arith.constant 0.000000e+00 : f32
    %119 = vector.broadcast %cst_33 : f32 to vector<8x256xf32>
    %120 = arith.maximumf %118, %119 : vector<8x256xf32>
    %c0_34 = arith.constant 0 : index
    %c0_35 = arith.constant 0 : index
    %c0_36 = arith.constant 0 : index
    %121 = vector.load %arg7[%c0_34, %c0_35, %c0_36] : memref<1x8x256xf32, #tpu.memory_space<vmem>>, vector<1x8x256xf32>
    %122 = vector.shape_cast %121 : vector<1x8x256xf32> to vector<8x256xf32>
    %123 = vector.shape_cast %120 : vector<8x256xf32> to vector<1x8x256xf32>
    tpu.vector_store %arg7[%c0_34, %c0_35, %c0_36], %123 {strides = array<i32>} : memref<1x8x256xf32, #tpu.memory_space<vmem>>, vector<1x8x256xf32>,
    return
  }
  func.func @transform_0(%arg0: i32) -> (i32, i32, i32) {
    %c0_i32 = arith.constant 0 : i32
    %c0_i32_0 = arith.constant 0 : i32
    %c0_i32_1 = arith.constant 0 : i32
    return %arg0, %c0_i32, %c0_i32_0 : i32, i32, i32
  }
  func.func @transform_1(%arg0: i32) -> (i32, i32) {
    %c0_i32 = arith.constant 0 : i32
    %c0_i32_0 = arith.constant 0 : i32
    %c0_i32_1 = arith.constant 0 : i32
    return %c0_i32, %c0_i32_0 : i32, i32
  }
  func.func @transform_2(%arg0: i32) -> (i32, i32) {
    %c0_i32 = arith.constant 0 : i32
    %c0_i32_0 = arith.constant 0 : i32
    %c0_i32_1 = arith.constant 0 : i32
    return %c0_i32, %c0_i32_0 : i32, i32
  }
  func.func @transform_3(%arg0: i32) -> (i32, i32) {
    %c0_i32 = arith.constant 0 : i32
    %c0_i32_0 = arith.constant 0 : i32
    %c0_i32_1 = arith.constant 0 : i32
    return %c0_i32, %c0_i32_0 : i32, i32
  }
  func.func @transform_4(%arg0: i32) -> (i32, i32) {
    %c0_i32 = arith.constant 0 : i32
    %c0_i32_0 = arith.constant 0 : i32
    %c0_i32_1 = arith.constant 0 : i32
    return %c0_i32, %c0_i32_0 : i32, i32
  }
  func.func @transform_5(%arg0: i32) -> (i32, i32) {
    %c0_i32 = arith.constant 0 : i32
    %c0_i32_0 = arith.constant 0 : i32
    %c0_i32_1 = arith.constant 0 : i32
    return %c0_i32, %c0_i32_0 : i32, i32
  }
  func.func @transform_6(%arg0: i32) -> (i32, i32, i32) {
    %c0_i32 = arith.constant 0 : i32
    %c0_i32_0 = arith.constant 0 : i32
    %c0_i32_1 = arith.constant 0 : i32
    return %arg0, %c0_i32, %c0_i32_0 : i32, i32, i32
  }
}

</mosaic_0001>

<bundles_post_ra>
// kernel: tpu_custom_call.1
= control target key start
LH: loop header
LB: loop body
LE: loop exit
PB: predicated region body
PF: predicated region fallthrough
CT: control target
= control target key end

     0   :  { %11 = vsyncpa [#allocation3], 0  ;;  %s1273_s0 = inlined_call_operand.vmem [shape: f32[2,4,256], index: 0, kind: input, shape index: {}]   ;;  %s1274_s1 = inlined_call_operand.vmem [shape: s32[2,256], index: 1, kind: input, shape index: {}]   ;;  %s1275_s2 = inlined_call_operand.vmem [shape: f32[4,9], index: 2, kind: input, shape index: {}]   ;;  %s1276_s3 = inlined_call_operand.vmem [shape: f32[4,1], index: 3, kind: input, shape index: {}]   ;;  %s1277_s4 = inlined_call_operand.vmem [shape: f32[8,4], index: 4, kind: input, shape index: {}]   ;;  %s1278_s5 = inlined_call_operand.vmem [shape: f32[8,1], index: 5, kind: input, shape index: {}]   ;;  %s1279_s6 = inlined_call_operand.hbm [shape: f32[2,8,256], index: 6, kind: output, shape index: {}]  }
   0x1   :  { %13 = vsyncpa [#allocation3 + $0x1], 0  ;;  %s956_s21 = smov 0   ;;  %s958_s22 = smov 0  }
   0x2   :  { %s960_s23 = smov 0   ;;  %s962_s24 = smov 0  }
   0x3 LB: > { %s977_s25 = sadd.s32 4294967295, %s899_s24   ;;  %s749_s26 = sadd.s32 4294967294, %s899_s24   ;;  %s899_s24 = sphi %s962_s24, %s1293_s24   ;;  %s895_s23 = sphi %s960_s23, %s1292_s23   ;;  %s891_s22 = sphi %s958_s22, %s1291_s22   ;;  %s887_s21 = sphi %s956_s21, %s1290_s21  }
   0x4   : > { %s981_s27 = sadd.s32 1, %s899_s24   ;;  %s157_s28 = sadd.s32 1, %s895_s23 }
   0x5   : > { %s154_s29 = ssub.s32 %s899_s24, %s981_s27  ;;  %p167_p0 = scmp.ne.s32.totalorder %s895_s23, %s891_s22 }
   0x6   : > { %p155_p1 = scmp.eq.s32.totalorder %s154_s29, 0  ;;  %p168_p2 = scmp.eq.s32.totalorder %s977_s25, 1 }
   0x7   : > { %p173_p3 = scmp.ne.s32.totalorder %s891_s22, %s887_s21  ;;  %p174_p4 = scmp.eq.s32.totalorder %s749_s26, 1 }
   0x8   : > { %s992_s30 = scalar_select %p155_p1, %s895_s23, %s157_s28  }
   0x9   : > { %p994_p5 = por %p168_p2, %p167_p0  ;;  %p998_p6 = por %p174_p4, %p173_p3 }
   0xa   : > { %p752_p7 = scmp.ge.s32.totalorder %s899_s24, 1  ;;  %p215_p8 = scmp.lt.s32.totalorder %s899_s24, 3 }
   0xc   : > { %p216_p9 = pnand %p752_p7, %p215_p8 }
   0xd   : > { %v251_v0 = vld [vmem:[%s1275_s2] sm:$0xf] (!%p216_p9)  ;;  %v901_v1 = vmov (!%p216_p9), 2   ;;  %v902_v2 = vmov (!%p216_p9), 0   ;;  %p245_p10 = scmp.lt.s32.totalorder (!%p216_p9), %s977_s25, 1  ;;  %v903_v3 = vmov (!%p216_p9), 4   ;;  %v260_v27 = vlaneseq (!%p216_p9) }
   0xe   : > { %219 = sbr.rel (%p216_p9) target bundleno = 444 (0x1bc), region = 44  ;;  %828 = vset.pattern.permute.xlu1 (!%p216_p9), %v901_v1  ;;  %826 = vset.pattern.permute.xlu0 (!%p216_p9), %v902_v2  ;;  %v904_v4 = vmov (!%p216_p9), 1   ;;  %v905_v6 = vmov (!%p216_p9), 3   ;;  %s906_s16 = smov (!%p216_p9), 17   ;;  %v907_v8 = vmov (!%p216_p9), 5   ;;  %v909_v9 = vmov (!%p216_p9), 7  }
   0xf   : > { %369 = vperm.xlu1 (!%p216_p9), %828, %v251_v0   ;;  %294 = vperm.xlu0 (!%p216_p9), %826, %v251_v0   ;;  %s908_s17 = smov (!%p216_p9), 16   ;;  %s910_s18 = smov (!%p216_p9), 15   ;;  %v911_v10 = vmov (!%p216_p9), 6   ;;  %v916_v11 = vmov (!%p216_p9), 8   ;;  %v572_v12 = vld [vmem:[%s1276_s3] sm:$0xf] (!%p216_p9) }
  0x10   : > { %s912_s19 = smov (!%p216_p9), 1   ;;  %s913_s20 = smov (!%p216_p9), 127   ;;  %v583_v13 = vld [vmem:[%s1278_s5] sm:$0xff] (!%p216_p9)  ;;  %v918_v14 = vmov (!%p216_p9), 0.0   ;;  %v273_v32 = vshrl.u32 (!%p216_p9), %v260_v27, 7  ;;  %v1096_v51 = vand.u32 (!%p216_p9), 127, %v260_v27 }
  0x11   : > { %s914_s26 = smov (!%p216_p9), 113   ;;  %s915_s28 = smov (!%p216_p9), 112   ;;  %664 = vmatprep.mubr.f32.mxu0 (!%p216_p9), %v918_v14  ;;  %v1039_v17 = vld [vmem:[%s1274_s1] sm:$0xf] (!%p216_p9)  ;;  %v919_v38 = vmov (!%p216_p9), 839922192  }
  0x12   : > { %vm265_vm0 = vcmp.ge.s32.totalorder (!%p216_p9), %v1039_v17, 1  ;;  %vm341_vm1 = vcmp.lt.s32.totalorder (!%p216_p9), %v1039_v17, 15  ;;  %v1074_v33 = vsub.s32 (!%p216_p9), 0, %v273_v32  ;;  %v1081_v35 = vsub.s32 (!%p216_p9), 2, %v273_v32 }
  0x13   : > { %829 = vset.pattern.permute.xlu1 (!%p216_p9), %v903_v3  ;;  %827 = vset.pattern.permute.xlu0 (!%p216_p9), %v904_v4  ;;  %v266_v20 = vsel (!%p216_p9), %vm265_vm0, 1, %v902_v2  ;;  %v1057_v23 = vsel (!%p216_p9), %vm341_vm1, 1, %v902_v2  ;;  %v415_v39 = vunpack.c.l.s4 (!%p216_p9), %v919_v38  ;;  %v1087_v42 = vsub.s32 (!%p216_p9), 1, %v273_v32 }
  0x14   : > { %412 = vperm.xlu1 (!%p216_p9), %829, %v251_v0   ;;  %327 = vperm.xlu0 (!%p216_p9), %827, %v251_v0   ;;  %v756_v24 = vrot.slane (!%p216_p9), %v266_v20, 9  ;;  %v757_v26 = vrot.slane (!%p216_p9), %v1057_v23, 9  ;;  %v389_v43 = vsub.s32 (!%p216_p9), 3, %v273_v32  ;;  %v309_v45 = vrot.slane (!%p216_p9), %v266_v20, %v1074_v33 }
  0x15   : > { %s246_s11 = scalar_select %p245_p10, %s977_s25, 1  ;;  %v313_v48 = vrot.slane %v266_v20, %v1081_v35  ;;  %v416_v52 = vunpack.c.0.s8 %v415_v39  ;;  %v386_v54 = vrot.slane %v266_v20, %v1087_v42  ;;  %vm262_vm7 = vcmp.lt.s32.totalorder %v1096_v51, 17 }
  0x16   : > { %vm1062_vm2 = vcmp.ne.s32.totalorder %v756_v24, 0  ;;  %vm1066_vm3 = vcmp.ne.s32.totalorder %v757_v26, 0  ;;  %v390_v55 = vrot.slane %v266_v20, %v389_v43  ;;  %v317_v57 = vrot.slane %v309_v45, %v1074_v33 }
  0x17   : > { %s766_s12 = sshll.u32 %s246_s11, 3  ;;  %vm270_vm4 = vmand %vm265_vm0, %vm1062_vm2  ;;  %v321_v59 = vrot.slane %v313_v48, %v1074_v33  ;;  %v1110_v63 = vsub.s32 %v416_v52, %v273_v32  ;;  %v438_v1 = vrot.slane %v1057_v23, %v1087_v42  ;;  %vm303_vm9 = vcmp.lt.s32.totalorder %v1096_v51, 16 }
  0x18   : > { %s249_s15 = scalar_lea.vmem %s1273_s0, %s766_s12  ;;  %830 = vset.pattern.permute.xlu1 %v905_v6  ;;  %831 = vset.pattern.permute.xlu0 %v907_v8  ;;  %s917_s12 = smov 111   ;;  %vm346_vm5 = vmand %vm265_vm0, %vm1066_vm3  ;;  %v271_v34 = vsel %vm270_vm4, 1, %v902_v2  ;;  %v394_v3 = vrot.slane %v386_v54, %v1087_v42  ;;  %v398_v4 = vrot.slane %v390_v55, %v1087_v42  ;;  %vm322_vm11 = vcmp.eq.s32.totalorder %v317_v57, 1 }
  0x19   : > { %v1013_v5 = vld [vmem:[%s249_s15] sm:$0xff]  ;;  %404 = vperm.xlu1 %830, %v251_v0   ;;  %v347_v40 = vsel %vm346_vm5, 1, %v902_v2  ;;  %v275_v41 = vrot.slane %v271_v34, %v1074_v33  ;;  %v279_v44 = vrot.slane %v271_v34, %v1081_v35  ;;  %vm470_vm6 = vmand %vm341_vm1, %vm1062_vm2  ;;  %vm323_vm12 = vcmp.eq.s32.totalorder %v321_v59, 1 }
  0x1a   : > { %256 = vrot.lane.b32.xlu0 %v1013_v5, %s906_s16  ;;  %v254_v7 = vcombine.high %v1013_v5, %v1013_v5  ;;  %v351_v49 = vrot.slane %v347_v40, %v1074_v33  ;;  %v355_v50 = vrot.slane %v347_v40, %v1081_v35  ;;  %v471_v62 = vsel %vm470_vm6, 1, %v902_v2 }
  0x1b   : > { %v283_v53 = vrot.slane %v275_v41, %v1074_v33  ;;  %v287_v56 = vrot.slane %v279_v44, %v1074_v33  ;;  %v475_v8 = vrot.slane %v471_v62, %v1074_v33  ;;  %vm338_vm13 = vcmp.lt.s32.totalorder %v1096_v51, 15 }
  0x1c   : > { %v359_v60 = vrot.slane %v351_v49, %v1074_v33  ;;  %v363_v61 = vrot.slane %v355_v50, %v1074_v33  ;;  %vm380_vm0 = vcmp.lt.s32.totalorder %v1096_v51, 1  ;;  %vm399_vm2 = vcmp.eq.s32.totalorder %v394_v3, 1 }
  0x1d   : > { %258 = vrot.lane.b32.xlu1 %v254_v7, %s906_s16  ;;  %vm288_vm8 = vcmp.eq.s32.totalorder %v283_v53, 1  ;;  %vm289_vm10 = vcmp.eq.s32.totalorder %v287_v56, 1  ;;  %vm1128_vm4 = vcmp.eq.s32.totalorder %v398_v4, 1  ;;  %vm432_vm5 = vcmp.lt.s32.totalorder %v1096_v51, 127 }
  0x1e   : > { %299 = vrot.lane.b32.xlu0 %v1013_v5, %s908_s17  ;;  %833 = vset.pattern.permute.xlu1 %v909_v9  ;;  %vm364_vm14 = vcmp.eq.s32.totalorder %v359_v60, 1  ;;  %vm365_vm15 = vcmp.eq.s32.totalorder %v363_v61, 1  ;;  %v483_v28 = vrot.slane %v475_v8, %v1074_v33  ;;  %v514_v38 = vrot.slane %v1057_v23, %v1081_v35 }
  0x21   : > { %301 = vrot.lane.b32.xlu1 %v254_v7, %s908_s17  ;;  %s242_s17 = sand.u32 1, %s891_s22  }
  0x22   : > { %334 = vrot.lane.b32.xlu0 %v1013_v5, %s910_s18  ;;  %s676_s10 = scalar_lea.sflag [#allocation3], %s242_s17 }
  0x25   : > { %336 = vrot.lane.b32.xlu1 %v254_v7, %s910_s18  ;;  %s753_s18 = sshll.u32 %s242_s17, 4 }
  0x26   : > { %456 = vperm.xlu0 %831, %v251_v0  }
  0x29   : > { %376 = vrot.lane.b32.xlu1 %v1013_v5, %s912_s19 }
  0x2a   : > { %832 = vset.pattern.permute.xlu0 %v911_v10 }
  0x2b   : > { %493 = vperm.xlu0 %832, %v251_v0  }
  0x2d   : > { %378 = vrot.lane.b32.xlu1 %v254_v7, %s912_s19  ;;  %s767_s19 = sshll.u32 %s977_s25, 8  ;;  %s920_s25 = smov [#allocation2]  }
  0x2e   : > { %s1231_s9 = scalar_lea.hbm %s1279_s6, %s767_s19 }
  0x2f   : > { %430 = vrot.lane.b32.xlu0 %v254_v7, %s913_s20 }
  0x30   : > { %835 = vset.pattern.permute.xlu0 %v902_v2 }
  0x31   : > { %528 = vperm.xlu1 %833, %v251_v0  }
  0x33   : > { %463 = vrot.lane.b32.xlu0 %v1013_v5, %s914_s26 }
  0x35   : > { %428 = vrot.lane.b32.xlu1 %v1013_v5, %s913_s20  ;;  %s244_s20 = scalar_lea.vmem [#allocation2], %s753_s18 }
  0x36   : > { %834 = vset.pattern.permute.xlu1 %v916_v11  ;;  %v446_v11 = vrot.slane %v438_v1, %v1087_v42 }
  0x37   : > { %500 = vrot.lane.b32.xlu0 %v1013_v5, %s915_s28 }
  0x38   : > { %vm451_vm6 = vcmp.eq.s32.totalorder %v446_v11, 1 }
  0x39   : > { %565 = vperm.xlu1 %834, %v251_v0  }
  0x3b   : > { %575 = vperm.xlu0 %835, %v572_v12   ;;  %v479_v12 = vrot.slane %v471_v62, %v1081_v35 }
  0x3d   : > { %465 = vrot.lane.b32.xlu1 %v254_v7, %s914_s26  ;;  %s690_s26 = sshll.u32 %s244_s20, 4  ;;  %s1233_s26 = int_to_ptr.vmem [resolvable:$true] %s690_s26 }
  0x3e   : > { %s837_s11 = scalar_lea.vmem %s1233_s26, 256 }
  0x3f   : > { %586 = vperm.xlu0 %835, %v583_v13   ;;  %p838_p11 = scmp.ne.s32.totalorder %s1233_s26, %s837_s11 }
  0x41   : > { %502 = vrot.lane.b32.xlu1 %v254_v7, %s915_s28  ;;  %p839_p12 = pnand %p838_p11, %p994_p5 }
  0x43   : > { %p840_p13 = pneg %p839_p12 }
  0x45   : > { %535 = vrot.lane.b32.xlu1 %v1013_v5, %s917_s12 }
  0x49   : > { %537 = vrot.lane.b32.xlu1 %v254_v7, %s917_s12  ;;  %v442_v7 = vrot.slane %v1057_v23, %v389_v43  ;;  %s841_s12 = sshll.u32 %s920_s25, 4  ;;  %s842_s12 = int_to_ptr.vmem [resolvable:$false] %s841_s12 }
  0x4a   : > { %s843_s13 = scalar_lea.vmem %s842_s12, 512  ;;  %p844_p0 = scmp.lt.s32.totalorder %s1233_s26, %s842_s12 }
  0x4b   : > { %v450_v26 = vrot.slane %v442_v7, %v1087_v42  ;;  %p845_p1 = scmp.lt.s32.totalorder %s843_s13, %s837_s11 }
  0x4d   : > { %p846_p2 = por %p845_p1, %p844_p0 }
  0x4f   : > { %p847_p3 = pnand %p846_p2, %p840_p13 }
  0x8e   : > { %v1032_v15 = vpop.permute.xlu1 %369  ;;  %v1034_v16 = vpop.permute.xlu0 %294 }
  0x93   : > { %v1041_v18 = vpop.permute.xlu1 %412  ;;  %v1043_v19 = vpop.permute.xlu0 %327 }
  0x97   : > { %v1052_v22 = vpop.permute.xlu0 %256 }
  0x98   : > { %v1050_v21 = vpop.permute.xlu1 %404 }
  0x9b   : > { %v300_v29 = vpop.permute.xlu0 %299 }
  0x9c   : > { %v1059_v25 = vpop.permute.xlu1 %258 }
  0x9d   : > { %v263_v14 = vsel %vm262_vm7, %v1052_v22, %v1059_v25  ;;  %v264_v20 = vsel %vm262_vm7, %v1059_v25, %v1052_v22  ;;  %v487_v22 = vrot.slane %v479_v12, %v1074_v33  ;;  %v510_v25 = vrot.slane %v1057_v23, %v1074_v33  ;;  %vm542_vm7 = vmand %vm341_vm1, %vm1066_vm3 }
  0x9e   : > { %v290_v39 = vsel %vm288_vm8, %v264_v20, 0.0  ;;  %v291_v40 = vsel %vm289_vm10, %v263_v14, 0.0  ;;  %v420_v23 = vrot.slane %v1041_v18, %v1110_v63  ;;  %vm1174_vm8 = vcmp.eq.s32.totalorder %v450_v26, 1 }
  0x9f   : > { %v1083_v36 = vpop.permute.xlu0 %334  ;;  %vm488_vm10 = vcmp.eq.s32.totalorder %v483_v28, 1  ;;  %v298_v48 = vmul.f32 %v1034_v16, %v291_v40  ;;  %vm489_vm1 = vcmp.eq.s32.totalorder %v487_v22, 1  ;;  %v543_v52 = vsel %vm542_vm7, 1, %v902_v2 }
  0xa0   : > { %v302_v30 = vpop.permute.xlu1 %301  ;;  %v518_v56 = vrot.slane %v510_v25, %v1074_v33  ;;  %v422_v60 = vmul.f32 %v420_v23, %v1013_v5  ;;  %vm504_vm3 = vcmp.lt.s32.totalorder %v1096_v51, 112  ;;  %v547_v2 = vrot.slane %v543_v52, %v1074_v33 }
  0xa1   : > { %v304_v9 = vsel %vm303_vm9, %v300_v29, %v302_v30  ;;  %v305_v10 = vsel %vm303_vm9, %v302_v30, %v300_v29  ;;  %vm467_vm9 = vcmp.lt.s32.totalorder %v1096_v51, 113  ;;  %v551_v61 = vrot.slane %v543_v52, %v1081_v35 }
  0xa2   : > { %v324_v29 = vsel %vm322_vm11, %v305_v10, 0.0  ;;  %v325_v30 = vsel %vm323_vm12, %v304_v9, 0.0  ;;  %vm523_vm11 = vcmp.eq.s32.totalorder %v518_v56, 1  ;;  %v555_v13 = vrot.slane %v547_v2, %v1074_v33 }
  0xa3   : > { %v559_v14 = vrot.slane %v551_v61, %v1074_v33  ;;  %v424_v20 = vcombine.high %v422_v60, %v422_v60 }
  0xa4   : > { %v337_v37 = vpop.permute.xlu1 %336 }
  0xa5   : > { %v1091_v47 = vpop.permute.xlu0 %456  ;;  %v339_v32 = vsel %vm338_vm13, %v1083_v36, %v337_v37  ;;  %v340_v34 = vsel %vm338_vm13, %v337_v37, %v1083_v36  ;;  %v330_v36 = vmul.f32 %v1043_v19, %v324_v29  ;;  %v331_v37 = vmul.f32 %v1043_v19, %v325_v30 }
  0xa6   : > { %v366_v43 = vsel %vm364_vm14, %v340_v34, 0.0  ;;  %v367_v44 = vsel %vm365_vm15, %v339_v32, 0.0  ;;  %v297_v19 = vmul.f32 %v1034_v16, %v290_v39  ;;  %v522_v16 = vrot.slane %v514_v38, %v1074_v33 }
  0xa7   : > { %v372_v50 = vmul.f32 %v1032_v15, %v366_v43  ;;  %v373_v18 = vmul.f32 %v1032_v15, %v367_v44  ;;  %v333_v54 = vadd.f32 %v331_v37, %v298_v48  ;;  %vm539_vm13 = vcmp.lt.s32.totalorder %v1096_v51, 111 }
  0xa8   : > { %v377_v46 = vpop.permute.xlu1 %376  ;;  %v332_v53 = vadd.f32 %v330_v36, %v297_v19  ;;  %vm524_vm12 = vcmp.eq.s32.totalorder %v522_v16, 1  ;;  %vm560_vm14 = vcmp.eq.s32.totalorder %v555_v13, 1  ;;  %vm561_vm15 = vcmp.eq.s32.totalorder %v559_v14, 1 }
  0xa9   : > { %v375_v63 = vadd.f32 %v373_v18, %v333_v54 }
  0xaa   : > { %v1113_v0 = vpop.permute.xlu0 %493  ;;  %v374_v62 = vadd.f32 %v372_v50, %v332_v53  ;;  %v582_v50 = vld [vmem:[%s1277_s4] sm:$0xff] }
  0xac   : > { %v379_v58 = vpop.permute.xlu1 %378 }
  0xad   : > { %v381_v41 = vsel %vm380_vm0, %v377_v46, %v379_v58  ;;  %v382_v42 = vsel %vm380_vm0, %v379_v58, %v377_v46  ;;  %vm593_vm0 = vcmask 1043456  }
  0xae   : > { %v431_v24 = vpop.permute.xlu0 %430  ;;  %v401_v49 = vsel %vm399_vm2, %v382_v42, 0.0  ;;  %v402_v17 = vsel %vm1128_vm4, %v381_v41, 0.0  ;;  %vm589_vm2 = vcmask 31744  }
  0xaf   : > { %v407_v57 = vmul.f32 %v1050_v21, %v401_v49  ;;  %v408_v58 = vmul.f32 %v1050_v21, %v402_v17 }
  0xb0   : > { %v1120_v6 = vpop.permute.xlu1 %528 }
  0xb1   : > { %v409_v8 = vadd.f32 %v407_v57, %v374_v62  ;;  %v410_v9 = vadd.f32 %v408_v58, %v375_v63 }
  0xb2   : > { %v464_v31 = vpop.permute.xlu0 %463 }
  0xb3   : > { %v426_v32 = vadd.f32 %v422_v60, %v409_v8  ;;  %v427_v34 = vadd.f32 %v424_v20, %v410_v9 }
  0xb4   : > { %v429_v27 = vpop.permute.xlu1 %428 }
  0xb5   : > { %v433_v59 = vsel %vm432_vm5, %v429_v27, %v431_v24  ;;  %v434_v15 = vsel %vm432_vm5, %v431_v24, %v429_v27 }
  0xb6   : > { %v453_v3 = vsel %vm451_vm6, %v433_v59, 0.0  ;;  %v454_v4 = vsel %vm1174_vm8, %v434_v15, 0.0  ;;  %v501_v5 = vpop.permute.xlu0 %500 }
  0xb7   : > { %v459_v24 = vmul.f32 %v1091_v47, %v453_v3  ;;  %v460_v26 = vmul.f32 %v1091_v47, %v454_v4 }
  0xb8   : > { %v1166_v45 = vpop.permute.xlu1 %565 }
  0xb9   : > { %v461_v22 = vadd.f32 %v459_v24, %v426_v32  ;;  %v462_v33 = vadd.f32 %v460_v26, %v427_v34 }
  0xba   : > { %v576_v48 = vpop.permute.xlu0 %575 }
  0xbc   : > { %v466_v55 = vpop.permute.xlu1 %465 }
  0xbd   : > { %v468_v1 = vsel %vm467_vm9, %v464_v31, %v466_v55  ;;  %v469_v21 = vsel %vm467_vm9, %v466_v55, %v464_v31 }
  0xbe   : > { %v490_v12 = vsel %vm488_vm10, %v468_v1, 0.0  ;;  %v491_v11 = vsel %vm489_vm1, %v469_v21, 0.0 }
  0xbf   : > { %v496_v25 = vmul.f32 %v1113_v0, %v490_v12  ;;  %v497_v28 = vmul.f32 %v1113_v0, %v491_v11 }
  0xc0   : > { %v503_v7 = vpop.permute.xlu1 %502 }
  0xc1   : > { %v505_v35 = vsel %vm504_vm3, %v501_v5, %v503_v7  ;;  %v506_v10 = vsel %vm504_vm3, %v503_v7, %v501_v5  ;;  %v498_v40 = vadd.f32 %v496_v25, %v461_v22  ;;  %v499_v41 = vadd.f32 %v497_v28, %v462_v33 }
  0xc2   : > { %v525_v27 = vsel %vm523_vm11, %v505_v35, 0.0  ;;  %v526_v29 = vsel %vm524_vm12, %v506_v10, 0.0 }
  0xc3   : > { %v531_v38 = vmul.f32 %v1120_v6, %v525_v27  ;;  %v532_v39 = vmul.f32 %v1120_v6, %v526_v29 }
  0xc4   : > { %v536_v30 = vpop.permute.xlu1 %535 }
  0xc5   : > { %v533_v51 = vadd.f32 %v531_v38, %v498_v40  ;;  %v534_v23 = vadd.f32 %v532_v39, %v499_v41 }
  0xc8   : > { %v538_v47 = vpop.permute.xlu1 %537 }
  0xc9   : > { %v540_v42 = vsel %vm539_vm13, %v536_v30, %v538_v47  ;;  %v541_v36 = vsel %vm539_vm13, %v538_v47, %v536_v30 }
  0xca   : > { %v562_v37 = vsel %vm560_vm14, %v540_v42, 0.0  ;;  %v563_v43 = vsel %vm561_vm15, %v541_v36, 0.0 }
  0xcb   : > { %v568_v44 = vmul.f32 %v1166_v45, %v562_v37  ;;  %v569_v0 = vmul.f32 %v1166_v45, %v563_v43  ;;  %v587_v45 = vpop.permute.xlu0 %586 }
  0xcd   : > { %v570_v46 = vadd.f32 %v568_v44, %v533_v51  ;;  %v571_v19 = vadd.f32 %v569_v0, %v534_v23 }
  0xcf   : > { %v578_v49 = vadd.f32 %v576_v48, %v570_v46  ;;  %v579_v6 = vadd.f32 %v576_v48, %v571_v19 }
  0xd1   : > { %v580_v17 = vmax.f32 %v578_v49, 0.0  ;;  %v581_v31 = vmax.f32 %v579_v6, 0.0 }
  0xd3   : > { %758 = vmatprep.subr.msk.mxu0 %vm593_vm0, %v581_v31 }
  0xd4   : > { %759 = vmatpush1.msk.msra.mxu0 %vm593_vm0, %v580_v17 }
  0xd5   : > { %760 = vmatmul.mubr.msk.f32.vlgmr.msra.gmra.mrb[0].mxu0 %vm589_vm2, %v582_v50 }
 0x1a8   : > { %v666_v18 = vpop.f32.mrb[0].mxu0 }
 0x1a9   : > { %v667_v52 = vadd.f32 %v666_v18, %v587_v45  ;;  %v668_v53 = vpop.f32.mrb[1].mxu0 }
 0x1aa   : > { %v669_v54 = vadd.f32 %v668_v53, %v587_v45 }
 0x1ab   : > { %v671_v55 = vmax.f32 %v667_v52, 0.0 }
 0x1ac   : > { %v672_v56 = vmax.f32 %v669_v54, 0.0 }
 0x1ad   : > { %673 = vst [vmem:[%s244_s20] sm:$0xff] %v671_v55 }
 0x1ae   : > { %674 = vst [vmem:[%s244_s20 + $0x8] sm:$0xff] %v672_v56 }
 0x1af   : > { %850 = shalt.err (!%p847_p3)
}
 0x1b0   : > { %s851_s14 = scalar_lea.hbm %s1231_s9, 256  ;;  %s855_s17 = scalar_lea.hbm %s1279_s6, 512 }
 0x1b1   : > { %p852_p4 = scmp.ne.s32.totalorder %s1231_s9, %s851_s14  ;;  %p856_p9 = scmp.lt.u32.totalorder %s1231_s9, %s1279_s6 }
 0x1b2   : > { %p857_p10 = scmp.lt.u32.totalorder %s855_s17, %s851_s14  ;;  %p859_p12 = scmp.lt.u32.totalorder %s851_s14, %s1231_s9 }
 0x1b3   : > { %p853_p7 = pnand %p852_p4, %p994_p5 }
 0x1b4   : > { %p858_p11 = por %p857_p10, %p856_p9 }
 0x1b5   : > { %p854_p8 = pneg %p853_p7 }
 0x1b6   : > { %p860_p13 = por %p859_p12, %p858_p11 }
 0x1b8   : > { %p861_p0 = pnand %p860_p13, %p854_p8 }
 0x1ba   : > { %864 = shalt.err (!%p861_p0)
}
 0x1bb   : > { %768 = dma.vmem_to_hbm [thread:$0]  (%p994_p5), %s1233_s26, 256, %s1231_s9, %s676_s10  }
 0x1bc PF: > { %p774_p1 = scmp.ge.s32.totalorder %s899_s24, 2  ;;  %s702_s20 = sand.u32 1, %s887_s21  }
 0x1bd   : > { %s703_s28 = scalar_lea.sflag [#allocation3], %s702_s20 }
 0x1be   : > { %p771_p2 = pnand %p774_p1, %p998_p6 }
 0x1c0   : > { %882 = dma.done.wait (!%p771_p2), %s703_s28, 256  }
 0x1c1   : > { %884 = vsyncadd (!%p771_p2), %s703_s28, 4294967040  ;;  %p16_p3 = scmp.ge.s32.totalorder %s981_s27, 4   ;;  %s1290_s21 = smov %s891_s22 }
 0x1c2   : > { %s1291_s22 = smov %s895_s23  ;;  %s1292_s23 = smov %s992_s30 }
 0x1c3   : > { %s1293_s24 = smov %s981_s27  ;;  %18 = sbr.rel (!%p16_p3) target bundleno = 3 (0x3), region = 79 }
 0x1ca   :  { %708 = vsyncpa [#allocation3], 1 }
 0x1cb   :  { %710 = vsyncpa [#allocation3 + $0x1], 1 }

</bundles_post_ra>
